<compile_context>
chip_gen: v5e
topology: v5e:2x2
jax: 0.10.0
libtpu: 0.0.40
codegen_flags: <defaults>
</compile_context>

<pallas_src>
import jax
import jax.numpy as jnp
from jax.experimental import pallas as pl
from jax.experimental.pallas import tpu as pltpu


def _round_up(x, m):
    return ((x + m - 1) // m) * m


def _choose_tb(batch, tb_max=1024, target_steps=4):
    """Pick a batch tile: big slabs for HBM efficiency, but keep >=2
    (ideally ~4) grid steps so the 'parallel' axis shards across v7x's two
    TensorCores and each core still pipelines."""
    bp8 = _round_up(batch, 8)
    tb = _round_up(pl.cdiv(bp8, target_steps), 8)
    tb = max(128, min(tb, tb_max))
    return min(tb, bp8)


def mlp_kernel(x_ref, w1_ref, b1_ref, w2_ref, b2_ref, o_ref):
    # Layer 1: x @ W1 on the MXU (bf16 inputs, f32 accumulate); bias + ReLU
    # on the VPU in f32.  x stays at its true feature width (MXU pads K).
    x = x_ref[...].astype(jnp.bfloat16)                               # (TB, F)
    h = jnp.dot(x, w1_ref[...], preferred_element_type=jnp.float32)  # (TB, Hp)
    h = jnp.maximum(h + b1_ref[...], 0.0)
    # Layer 2: h @ W2 (+ b2).  W2 keeps its true output width O so the store
    # below only writes real lanes (minimal HBM writeback).
    y = jnp.dot(h.astype(jnp.bfloat16), w2_ref[...],
                preferred_element_type=jnp.float32)                   # (TB, O)
    o_ref[...] = (y + b2_ref[...]).astype(o_ref.dtype)


def prepare_params(w1, b1, w2, b2):
    """One-time parameter prep (hoisted out of the per-call path): pad the
    hidden dim to a lane-dense multiple of 128 and cast matmul weights to
    bf16.  Zero padding keeps results exact (padded hidden units -> ReLU(0)=0,
    and the matching W2 rows are zero)."""
    F, H = w1.shape
    O = w2.shape[1]
    Hp = _round_up(H, 128)
    w1_p = jnp.pad(w1, ((0, 0), (0, Hp - H))).astype(jnp.bfloat16)    # (F, Hp)
    b1_p = jnp.pad(b1, (0, Hp - H)).reshape(1, Hp).astype(jnp.float32)
    w2_p = jnp.pad(w2, ((0, Hp - H), (0, 0))).astype(jnp.bfloat16)    # (Hp, O)
    b2_p = b2.reshape(1, O).astype(jnp.float32)
    return w1_p, b1_p, w2_p, b2_p


@jax.jit
def mlp_forward(x, params):
    """x: (B, F) f32; params from prepare_params().  Returns (B, O) f32."""
    w1_p, b1_p, w2_p, b2_p = params
    B, F = x.shape
    Hp = w1_p.shape[1]
    O = w2_p.shape[1]

    TB = _choose_tb(B)
    Bp = _round_up(B, TB)
    x_p = jnp.pad(x, ((0, Bp - B), (0, 0))) if Bp != B else x

    cost = pl.CostEstimate(
        flops=int(2 * Bp * (F * Hp + Hp * O)),
        transcendentals=0,
        bytes_accessed=int(Bp * F * 4 + Bp * O * 4          # x read, y write
                           + F * Hp * 2 + Hp * 4             # w1 + b1
                           + Hp * O * 2 + O * 4),            # w2 + b2
    )

    out_p = pl.pallas_call(
        mlp_kernel,
        out_shape=jax.ShapeDtypeStruct((Bp, O), jnp.float32),
        grid_spec=pl.GridSpec(
            grid=(Bp // TB,),
            in_specs=[
                # Activations: tiled over batch (auto double-buffered); last
                # dim kept at the true F (full-dim block) to avoid padded
                # HBM reads.
                pl.BlockSpec((TB, F), lambda i: (i, 0)),
                # Weights / biases: constant index_map -> resident in VMEM.
                pl.BlockSpec((F, Hp), lambda i: (0, 0)),
                pl.BlockSpec((1, Hp), lambda i: (0, 0)),
                pl.BlockSpec((Hp, O), lambda i: (0, 0)),
                pl.BlockSpec((1, O), lambda i: (0, 0)),
            ],
            # Output at its true width: full-last-dim block is legal and
            # writes only real data back to HBM.
            out_specs=pl.BlockSpec((TB, O), lambda i: (i, 0)),
        ),
        compiler_params=pltpu.CompilerParams(
            dimension_semantics=("parallel",),
        ),
        cost_estimate=cost,
    )(x_p, w1_p, b1_p, w2_p, b2_p)

    return out_p[:B] if Bp != B else out_p


if __name__ == "__main__":
    # Small shapes consistent with the module's forward; batch large enough
    # to exercise batch tiling (TB=128 -> grid of 2 steps).
    batch, n_features, n_hidden, n_output = 256, 16, 32, 4

    key = jax.random.PRNGKey(0)
    kx, kw1, kb1, kw2, kb2 = jax.random.split(key, 5)

    x = jax.random.normal(kx, (batch, n_features), dtype=jnp.float32)

    # Deterministic parameter init (PyTorch Linear default-ish uniform range),
    # stored as (in, out) so the kernel computes x @ W directly.
    lim1 = 1.0 / jnp.sqrt(n_features)
    w1 = jax.random.uniform(kw1, (n_features, n_hidden), jnp.float32, -lim1, lim1)
    b1 = jax.random.uniform(kb1, (n_hidden,), jnp.float32, -lim1, lim1)

    lim2 = 1.0 / jnp.sqrt(n_hidden)
    w2 = jax.random.uniform(kw2, (n_hidden, n_output), jnp.float32, -lim2, lim2)
    b2 = jax.random.uniform(kb2, (n_output,), jnp.float32, -lim2, lim2)

    params = prepare_params(w1, b1, w2, b2)   # one-time prep (constant weights)
    out = mlp_forward(x, params)
    out = jax.block_until_ready(out)
    assert out.shape == (batch, n_output)

    # Pure-JAX reference mirroring the kernel arithmetic (bf16 matmul inputs,
    # f32 accumulation, f32 bias/ReLU) for a tight tolerance check.
    xb = x.astype(jnp.bfloat16).astype(jnp.float32)
    w1b = w1.astype(jnp.bfloat16).astype(jnp.float32)
    w2b = w2.astype(jnp.bfloat16).astype(jnp.float32)
    h_ref = jnp.maximum(xb @ w1b + b1, 0.0)
    ref = h_ref.astype(jnp.bfloat16).astype(jnp.float32) @ w2b + b2
    assert jnp.allclose(out, ref, atol=1e-3, rtol=1e-3)

    # Sanity vs. the exact f32 forward (bounded only by bf16 input rounding).
    ref_f32 = jnp.maximum(x @ w1 + b1, 0.0) @ w2 + b2
    assert jnp.allclose(out, ref_f32, atol=5e-2, rtol=5e-2)

    print("KERNEL_OK")
</pallas_src>

<mosaic_0001>
module attributes {stable_mosaic.version = 11 : i64} {
  func.func @mlp_kernel(%arg0: i32, %arg1: memref<128x16xf32, #tpu.memory_space<vmem>>, %arg2: memref<16x128xbf16, #tpu.memory_space<vmem>>, %arg3: memref<1x128xf32, #tpu.memory_space<vmem>>, %arg4: memref<128x4xbf16, #tpu.memory_space<vmem>>, %arg5: memref<1x4xf32, #tpu.memory_space<vmem>>, %arg6: memref<128x4xf32, #tpu.memory_space<vmem>>) attributes {dimension_semantics = [#tpu.dimension_semantics<parallel>], iteration_bounds = array<i64: 2>, scalar_prefetch = 0 : i64, scratch_operands = 0 : i64, tpu.core_type = #tpu.core_type<tc>, window_params = [{transform_indices = @transform_0, window_bounds = array<i64: 128, 16>}, {pipeline_mode = #tpu.pipeline_mode<synchronous>, transform_indices = @transform_1, window_bounds = array<i64: 16, 128>}, {pipeline_mode = #tpu.pipeline_mode<synchronous>, transform_indices = @transform_2, window_bounds = array<i64: 1, 128>}, {pipeline_mode = #tpu.pipeline_mode<synchronous>, transform_indices = @transform_3, window_bounds = array<i64: 128, 4>}, {pipeline_mode = #tpu.pipeline_mode<synchronous>, transform_indices = @transform_4, window_bounds = array<i64: 1, 4>}, {transform_indices = @transform_5, window_bounds = array<i64: 128, 4>}]} {
    %c0 = arith.constant 0 : index
    %c0_0 = arith.constant 0 : index
    %0 = vector.load %arg1[%c0, %c0_0] : memref<128x16xf32, #tpu.memory_space<vmem>>, vector<128x16xf32>
    %1 = arith.truncf %0 : vector<128x16xf32> to vector<128x16xbf16>
    %c0_1 = arith.constant 0 : index
    %c0_2 = arith.constant 0 : index
    %2 = vector.load %arg2[%c0_1, %c0_2] : memref<16x128xbf16, #tpu.memory_space<vmem>>, vector<16x128xbf16>
    %cst = arith.constant dense<0.000000e+00> : vector<128x128xf32>
    %3 = tpu.matmul %1, %2, %cst {dimension_numbers = #tpu.dot_dimension_numbers<[1], [0], [0], [1], [0, 0, 1, 1], [], []>} : vector<128x16xbf16>, vector<16x128xbf16>, vector<128x128xf32> -> vector<128x128xf32>
    %c0_3 = arith.constant 0 : index
    %c0_4 = arith.constant 0 : index
    %4 = vector.load %arg3[%c0_3, %c0_4] : memref<1x128xf32, #tpu.memory_space<vmem>>, vector<1x128xf32>
    %5 = vector.broadcast %4 : vector<1x128xf32> to vector<128x128xf32>
    %6 = arith.addf %3, %5 : vector<128x128xf32>
    %cst_5 = arith.constant 0.000000e+00 : f32
    %7 = vector.broadcast %cst_5 : f32 to vector<128x128xf32>
    %8 = arith.maximumf %6, %7 : vector<128x128xf32>
    %9 = arith.truncf %8 : vector<128x128xf32> to vector<128x128xbf16>
    %c0_6 = arith.constant 0 : index
    %c0_7 = arith.constant 0 : index
    %10 = vector.load %arg4[%c0_6, %c0_7] : memref<128x4xbf16, #tpu.memory_space<vmem>>, vector<128x4xbf16>
    %cst_8 = arith.constant dense<0.000000e+00> : vector<128x4xf32>
    %11 = tpu.matmul %9, %10, %cst_8 {dimension_numbers = #tpu.dot_dimension_numbers<[1], [0], [0], [1], [0, 0, 1, 1], [], []>} : vector<128x128xbf16>, vector<128x4xbf16>, vector<128x4xf32> -> vector<128x4xf32>
    %c0_9 = arith.constant 0 : index
    %c0_10 = arith.constant 0 : index
    %12 = vector.load %arg5[%c0_9, %c0_10] : memref<1x4xf32, #tpu.memory_space<vmem>>, vector<1x4xf32>
    %13 = vector.broadcast %12 : vector<1x4xf32> to vector<128x4xf32>
    %14 = arith.addf %11, %13 : vector<128x4xf32>
    %c0_11 = arith.constant 0 : index
    %c0_12 = arith.constant 0 : index
    %15 = vector.load %arg6[%c0_11, %c0_12] : memref<128x4xf32, #tpu.memory_space<vmem>>, vector<128x4xf32>
    tpu.vector_store %arg6[%c0_11, %c0_12], %14 {strides = array<i32>} : memref<128x4xf32, #tpu.memory_space<vmem>>, vector<128x4xf32>,
    return
  }
  func.func @transform_0(%arg0: i32) -> (i32, i32) {
    %c0_i32 = arith.constant 0 : i32
    %c0_i32_0 = arith.constant 0 : i32
    return %arg0, %c0_i32 : i32, i32
  }
  func.func @transform_1(%arg0: i32) -> (i32, i32) {
    %c0_i32 = arith.constant 0 : i32
    %c0_i32_0 = arith.constant 0 : i32
    %c0_i32_1 = arith.constant 0 : i32
    return %c0_i32, %c0_i32_0 : i32, i32
  }
  func.func @transform_2(%arg0: i32) -> (i32, i32) {
    %c0_i32 = arith.constant 0 : i32
    %c0_i32_0 = arith.constant 0 : i32
    %c0_i32_1 = arith.constant 0 : i32
    return %c0_i32, %c0_i32_0 : i32, i32
  }
  func.func @transform_3(%arg0: i32) -> (i32, i32) {
    %c0_i32 = arith.constant 0 : i32
    %c0_i32_0 = arith.constant 0 : i32
    %c0_i32_1 = arith.constant 0 : i32
    return %c0_i32, %c0_i32_0 : i32, i32
  }
  func.func @transform_4(%arg0: i32) -> (i32, i32) {
    %c0_i32 = arith.constant 0 : i32
    %c0_i32_0 = arith.constant 0 : i32
    %c0_i32_1 = arith.constant 0 : i32
    return %c0_i32, %c0_i32_0 : i32, i32
  }
  func.func @transform_5(%arg0: i32) -> (i32, i32) {
    %c0_i32 = arith.constant 0 : i32
    %c0_i32_0 = arith.constant 0 : i32
    return %arg0, %c0_i32 : i32, i32
  }
}

</mosaic_0001>

<bundles_post_ra>
// kernel: mlp_forward.1
= control target key start
LH: loop header
LB: loop body
LE: loop exit
PB: predicated region body
PF: predicated region fallthrough
CT: control target
= control target key end

     0   :  { %s674_s18 = smov 0   ;;  %s791_s0 = inlined_call_operand.vmem [shape: f32[256,16], index: 0, kind: input, shape index: {}]   ;;  %s792_s1 = inlined_call_operand.vmem [shape: bf16[16,128], index: 1, kind: input, shape index: {}]   ;;  %s793_s2 = inlined_call_operand.vmem [shape: f32[1,128], index: 2, kind: input, shape index: {}]   ;;  %s794_s3 = inlined_call_operand.vmem [shape: bf16[128,4], index: 3, kind: input, shape index: {}]   ;;  %s795_s4 = inlined_call_operand.vmem [shape: f32[1,4], index: 4, kind: input, shape index: {}]   ;;  %s796_s5 = inlined_call_operand.vmem [shape: f32[256,4], index: 5, kind: output, shape index: {}]  }
   0x1 LB: > { %s553_s19 = sadd.s32 4294967295, %s642_s18   ;;  %p557_p0 = scmp.ge.s32.totalorder %s642_s18, 1  ;;  %s642_s18 = sphi %s674_s18, %s15_s18  }
   0x2   : > { %p188_p1 = scmp.lt.s32.totalorder %s642_s18, 3 }
   0x4   : > { %p189_p2 = pnand %p557_p0, %p188_p1 }
   0x5   : > { %s558_s22 = sshll.u32 (!%p189_p2), %s553_s19, 4 }
   0x6   : > { %192 = sbr.rel (%p189_p2) target bundleno = 412 (0x19c), region = 40  ;;  %p217_p3 = scmp.lt.s32.totalorder (!%p189_p2), %s558_s22, 31 }
   0xb   : > { %v608_v0 = vld [vmem:[%s792_s1] sm:$0xff]  ;;  %s798_s22 = smov (!%p217_p3, %s558_s22), 31  ;;  %vm265_vm0 = vcmask 130048   ;;  %v616_v13 = vld [vmem:[%s794_s3 + $0x38] sm:$0xff]  ;;  %v615_v14 = vld [vmem:[%s794_s3 + $0x30] sm:$0xff]  ;;  %vm480_vm1 = vcmask 31744  }
   0xc   : > { %297 = vmatpush.bf16.msra.mxu0 %v608_v0  ;;  %617 = vmatpush.bf16.msra.mxu3 %v608_v0  ;;  %s559_s23 = sshll.u32 %s798_s22, 3  ;;  %v614_v15 = vld [vmem:[%s794_s3 + $0x28] sm:$0xff]  ;;  %v613_v21 = vld [vmem:[%s794_s3 + $0x20] sm:$0xff]  ;;  %v612_v29 = vld [vmem:[%s794_s3 + $0x18] sm:$0xff] }
   0xd   : > { %s693_s26 = scalar_lea.vmem %s791_s0, %s559_s23  ;;  %431 = vmatpush.bf16.msra.mxu1 %v616_v13  ;;  %618 = vmatpush.bf16.msra.mxu2 %v616_v13  ;;  %v611_v30 = vld [vmem:[%s794_s3 + $0x10] sm:$0xff]  ;;  %v610_v31 = vld [vmem:[%s794_s3 + $0x8] sm:$0xff]  ;;  %v609_v32 = vld [vmem:[%s794_s3] sm:$0xff]  ;;  %s754_s27 = scalar_lea.vmem %s796_s5, %s559_s23 }
   0xe   : > { %v229_v1 = vld [vmem:[%s693_s26] sm:$0xff]  ;;  %v230_v2 = vld [vmem:[%s693_s26 + $0x8] sm:$0xff]  ;;  %v231_v4 = vld [vmem:[%s693_s26 + $0x10] sm:$0xff] }
   0xf   : > { %v245_v3 = vpack.c.bf16 %v230_v2, %v229_v1  ;;  %v232_v5 = vld [vmem:[%s693_s26 + $0x18] sm:$0xff]  ;;  %v233_v7 = vld [vmem:[%s693_s26 + $0x20] sm:$0xff]  ;;  %v234_v8 = vld [vmem:[%s693_s26 + $0x28] sm:$0xff] }
  0x10   : > { %v246_v6 = vpack.c.bf16 %v232_v5, %v231_v4  ;;  %v247_v9 = vpack.c.bf16 %v234_v8, %v233_v7  ;;  %v239_v10 = vld [vmem:[%s693_s26 + $0x50] sm:$0xff]  ;;  %v240_v11 = vld [vmem:[%s693_s26 + $0x58] sm:$0xff]  ;;  %v241_v18 = vld [vmem:[%s693_s26 + $0x60] sm:$0xff] }
  0x11   : > { %566 = vmatmul.msk.bf16.vlgmr.msra.gmra.mxu0 %vm265_vm0, %v245_v3  ;;  %v250_v12 = vpack.c.bf16 %v240_v11, %v239_v10  ;;  %432 = vmatpush.bf16.msra.mxu1 %v615_v14  ;;  %v235_v16 = vld [vmem:[%s693_s26 + $0x30] sm:$0xff]  ;;  %v236_v17 = vld [vmem:[%s693_s26 + $0x38] sm:$0xff]  ;;  %v242_v19 = vld [vmem:[%s693_s26 + $0x68] sm:$0xff] }
  0x12   : > { %619 = vmatpush.bf16.msra.mxu2 %v615_v14  ;;  %v248_v20 = vpack.c.bf16 %v236_v17, %v235_v16  ;;  %v251_v22 = vpack.c.bf16 %v242_v19, %v241_v18  ;;  %v237_v23 = vld [vmem:[%s693_s26 + $0x40] sm:$0xff]  ;;  %v238_v24 = vld [vmem:[%s693_s26 + $0x48] sm:$0xff]  ;;  %v243_v25 = vld [vmem:[%s693_s26 + $0x70] sm:$0xff] }
  0x13   : > { %571 = vmatmul.msk.bf16.vlgmr.msra.gmra.mxu3 %vm265_vm0, %v250_v12  ;;  %v244_v26 = vld [vmem:[%s693_s26 + $0x78] sm:$0xff]  ;;  %v249_v27 = vpack.c.bf16 %v238_v24, %v237_v23  ;;  %v634_v34 = vld [vmem:[%s793_s2] ss:$0 sm:$0xff] }
  0x14   : > { %v252_v28 = vpack.c.bf16 %v244_v26, %v243_v25  ;;  %v635_v26 = vld [vmem:[%s795_s4] ss:$0 sm:$0xff] }
  0x15   : > { %433 = vmatpush.bf16.msra.mxu1 %v614_v15 }
  0x16   : > { %620 = vmatpush.bf16.msra.mxu2 %v614_v15 }
  0x19   : > { %434 = vmatpush.bf16.msra.mxu1 %v613_v21 }
  0x1a   : > { %621 = vmatpush.bf16.msra.mxu2 %v613_v21 }
  0x1d   : > { %435 = vmatpush.bf16.msra.mxu1 %v612_v29 }
  0x1e   : > { %622 = vmatpush.bf16.msra.mxu2 %v612_v29 }
  0x21   : > { %567 = vmatmul.msk.bf16.gmra.mxu0 %vm265_vm0, %v246_v6  ;;  %436 = vmatpush.bf16.msra.mxu1 %v611_v30 }
  0x22   : > { %623 = vmatpush.bf16.msra.mxu2 %v611_v30 }
  0x23   : > { %572 = vmatmul.msk.bf16.gmra.mxu3 %vm265_vm0, %v251_v22 }
  0x25   : > { %437 = vmatpush.bf16.msra.mxu1 %v610_v31 }
  0x26   : > { %624 = vmatpush.bf16.msra.mxu2 %v610_v31 }
  0x29   : > { %438 = vmatpush.bf16.msra.mxu1 %v609_v32 }
  0x2a   : > { %625 = vmatpush.bf16.msra.mxu2 %v609_v32 }
  0x31   : > { %568 = vmatmul.msk.bf16.gmra.mxu0 %vm265_vm0, %v247_v9 }
  0x33   : > { %573 = vmatmul.msk.bf16.gmra.mxu3 %vm265_vm0, %v252_v28 }
  0x41   : > { %569 = vmatmul.msk.bf16.gmra.mxu0 %vm265_vm0, %v248_v20 }
  0x51   : > { %570 = vmatmul.msk.bf16.gmra.mxu0 %vm265_vm0, %v249_v27 }
  0x8e   : > { %v299_v33 = vpop.f32.mrf.mxu0 }
  0x8f   : > { %v300_v35 = vadd.f32 %v634_v34, %v299_v33 }
  0x91   : > { %v339_v38 = vmax.f32 %v300_v35, 0.0 }
  0x96   : > { %v301_v36 = vpop.f32.mrf.mxu0  ;;  %v324_v63 = vpop.f32.mrf.mxu3 }
  0x97   : > { %v302_v37 = vadd.f32 %v634_v34, %v301_v36  ;;  %v325_v8 = vadd.f32 %v634_v34, %v324_v63 }
  0x99   : > { %v340_v39 = vmax.f32 %v302_v37, 0.0  ;;  %v349_v10 = vmax.f32 %v325_v8, 0.0 }
  0x9b   : > { %v355_v40 = vpack.c.bf16 %v340_v39, %v339_v38 }
  0x9d   : > { %439 = vmatmul.bf16.vlgmr.msra.gmra.mxu1 %v355_v40 }
  0x9e   : > { %v304_v41 = vpop.f32.mrf.mxu0  ;;  %v326_v3 = vpop.f32.mrf.mxu3 }
  0x9f   : > { %v305_v42 = vadd.f32 %v634_v34, %v304_v41  ;;  %v327_v9 = vadd.f32 %v634_v34, %v326_v3 }
  0xa1   : > { %v341_v45 = vmax.f32 %v305_v42, 0.0  ;;  %v350_v11 = vmax.f32 %v327_v9, 0.0 }
  0xa3   : > { %v360_v12 = vpack.c.bf16 %v350_v11, %v349_v10 }
  0xa6   : > { %v306_v43 = vpop.f32.mrf.mxu0  ;;  %v329_v7 = vpop.f32.mrf.mxu3 }
  0xa7   : > { %v307_v44 = vadd.f32 %v634_v34, %v306_v43  ;;  %v330_v14 = vadd.f32 %v634_v34, %v329_v7 }
  0xa9   : > { %v342_v46 = vmax.f32 %v307_v44, 0.0  ;;  %v351_v17 = vmax.f32 %v330_v14, 0.0 }
  0xab   : > { %v356_v47 = vpack.c.bf16 %v342_v46, %v341_v45 }
  0xad   : > { %444 = vmatmul.bf16.gmra.mxu1 %v356_v47 }
  0xae   : > { %v309_v48 = vpop.f32.mrf.mxu0  ;;  %v331_v13 = vpop.f32.mrf.mxu3 }
  0xaf   : > { %v310_v49 = vadd.f32 %v634_v34, %v309_v48  ;;  %v332_v15 = vadd.f32 %v634_v34, %v331_v13 }
  0xb1   : > { %v343_v52 = vmax.f32 %v310_v49, 0.0  ;;  %v352_v18 = vmax.f32 %v332_v15, 0.0 }
  0xb3   : > { %v361_v19 = vpack.c.bf16 %v352_v18, %v351_v17 }
  0xb6   : > { %v311_v50 = vpop.f32.mrf.mxu0  ;;  %v334_v16 = vpop.f32.mrf.mxu3 }
  0xb7   : > { %v312_v51 = vadd.f32 %v634_v34, %v311_v50  ;;  %v335_v21 = vadd.f32 %v634_v34, %v334_v16 }
  0xb9   : > { %v344_v53 = vmax.f32 %v312_v51, 0.0  ;;  %v353_v23 = vmax.f32 %v335_v21, 0.0 }
  0xbb   : > { %v357_v54 = vpack.c.bf16 %v344_v53, %v343_v52 }
  0xbd   : > { %449 = vmatmul.bf16.gmra.mxu1 %v357_v54 }
  0xbe   : > { %v314_v55 = vpop.f32.mrf.mxu0  ;;  %v336_v20 = vpop.f32.mrf.mxu3 }
  0xbf   : > { %v315_v56 = vadd.f32 %v634_v34, %v314_v55  ;;  %v337_v22 = vadd.f32 %v634_v34, %v336_v20 }
  0xc1   : > { %v345_v59 = vmax.f32 %v315_v56, 0.0  ;;  %v354_v24 = vmax.f32 %v337_v22, 0.0 }
  0xc3   : > { %v362_v25 = vpack.c.bf16 %v354_v24, %v353_v23 }
  0xc6   : > { %v316_v57 = vpop.f32.mrf.mxu0 }
  0xc7   : > { %v317_v58 = vadd.f32 %v634_v34, %v316_v57 }
  0xc9   : > { %v346_v60 = vmax.f32 %v317_v58, 0.0 }
  0xcb   : > { %v358_v61 = vpack.c.bf16 %v346_v60, %v345_v59 }
  0xcd   : > { %454 = vmatmul.bf16.gmra.mxu1 %v358_v61 }
  0xce   : > { %v319_v62 = vpop.f32.mrf.mxu0 }
  0xcf   : > { %v320_v0 = vadd.f32 %v634_v34, %v319_v62 }
  0xd1   : > { %v347_v4 = vmax.f32 %v320_v0, 0.0 }
  0xd6   : > { %v321_v1 = vpop.f32.mrf.mxu0 }
  0xd7   : > { %v322_v2 = vadd.f32 %v634_v34, %v321_v1 }
  0xd9   : > { %v348_v5 = vmax.f32 %v322_v2, 0.0 }
  0xdb   : > { %v359_v6 = vpack.c.bf16 %v348_v5, %v347_v4 }
  0xdd   : > { %459 = vmatmul.bf16.vlgmr.msra.gmra.mxu2 %v359_v6 }
  0xed   : > { %464 = vmatmul.bf16.gmra.mxu2 %v360_v12 }
  0xfd   : > { %469 = vmatmul.bf16.gmra.mxu2 %v361_v19 }
 0x10d   : > { %474 = vmatmul.bf16.gmra.mxu2 %v362_v25 }
 0x11a   : > { %v440_v27 = vpop.f32.mrf.mxu1 }
 0x11b   : > { %v441_v28 = vadd.f32 %v635_v26, %v440_v27 }
 0x11d   : > { %481 = vst.msk [vmem:[%s754_s27] sm:$0xff] %vm480_vm1, %v441_v28 }
 0x122   : > { %v442_v29 = vpop.f32.mrf.mxu1 }
 0x123   : > { %v443_v30 = vadd.f32 %v635_v26, %v442_v29 }
 0x125   : > { %482 = vst.msk [vmem:[%s754_s27 + $0x8] sm:$0xff] %vm480_vm1, %v443_v30 }
 0x12a   : > { %v445_v31 = vpop.f32.mrf.mxu1 }
 0x12b   : > { %v446_v32 = vadd.f32 %v635_v26, %v445_v31 }
 0x12d   : > { %483 = vst.msk [vmem:[%s754_s27 + $0x10] sm:$0xff] %vm480_vm1, %v446_v32 }
 0x132   : > { %v447_v33 = vpop.f32.mrf.mxu1 }
 0x133   : > { %v448_v34 = vadd.f32 %v635_v26, %v447_v33 }
 0x135   : > { %484 = vst.msk [vmem:[%s754_s27 + $0x18] sm:$0xff] %vm480_vm1, %v448_v34 }
 0x13a   : > { %v450_v35 = vpop.f32.mrf.mxu1 }
 0x13b   : > { %v451_v36 = vadd.f32 %v635_v26, %v450_v35 }
 0x13d   : > { %485 = vst.msk [vmem:[%s754_s27 + $0x20] sm:$0xff] %vm480_vm1, %v451_v36 }
 0x142   : > { %v452_v37 = vpop.f32.mrf.mxu1 }
 0x143   : > { %v453_v38 = vadd.f32 %v635_v26, %v452_v37 }
 0x145   : > { %486 = vst.msk [vmem:[%s754_s27 + $0x28] sm:$0xff] %vm480_vm1, %v453_v38 }
 0x14a   : > { %v455_v39 = vpop.f32.mrf.mxu1 }
 0x14b   : > { %v456_v40 = vadd.f32 %v635_v26, %v455_v39 }
 0x14d   : > { %487 = vst.msk [vmem:[%s754_s27 + $0x30] sm:$0xff] %vm480_vm1, %v456_v40 }
 0x152   : > { %v457_v41 = vpop.f32.mrf.mxu1 }
 0x153   : > { %v458_v42 = vadd.f32 %v635_v26, %v457_v41 }
 0x155   : > { %488 = vst.msk [vmem:[%s754_s27 + $0x38] sm:$0xff] %vm480_vm1, %v458_v42 }
 0x160   : > { %v460_v43 = vpop.f32.mrf.mxu2 }
 0x161   : > { %v461_v44 = vadd.f32 %v635_v26, %v460_v43 }
 0x163   : > { %489 = vst.msk [vmem:[%s754_s27 + $0x40] sm:$0xff] %vm480_vm1, %v461_v44 }
 0x168   : > { %v462_v45 = vpop.f32.mrf.mxu2 }
 0x169   : > { %v463_v46 = vadd.f32 %v635_v26, %v462_v45 }
 0x16b   : > { %490 = vst.msk [vmem:[%s754_s27 + $0x48] sm:$0xff] %vm480_vm1, %v463_v46 }
 0x170   : > { %v465_v47 = vpop.f32.mrf.mxu2 }
 0x171   : > { %v466_v48 = vadd.f32 %v635_v26, %v465_v47 }
 0x173   : > { %491 = vst.msk [vmem:[%s754_s27 + $0x50] sm:$0xff] %vm480_vm1, %v466_v48 }
 0x178   : > { %v467_v49 = vpop.f32.mrf.mxu2 }
 0x179   : > { %v468_v50 = vadd.f32 %v635_v26, %v467_v49 }
 0x17b   : > { %492 = vst.msk [vmem:[%s754_s27 + $0x58] sm:$0xff] %vm480_vm1, %v468_v50 }
 0x180   : > { %v470_v51 = vpop.f32.mrf.mxu2 }
 0x181   : > { %v471_v52 = vadd.f32 %v635_v26, %v470_v51 }
 0x183   : > { %493 = vst.msk [vmem:[%s754_s27 + $0x60] sm:$0xff] %vm480_vm1, %v471_v52 }
 0x188   : > { %v472_v53 = vpop.f32.mrf.mxu2 }
 0x189   : > { %v473_v54 = vadd.f32 %v635_v26, %v472_v53 }
 0x18b   : > { %494 = vst.msk [vmem:[%s754_s27 + $0x68] sm:$0xff] %vm480_vm1, %v473_v54 }
 0x190   : > { %v475_v55 = vpop.f32.mrf.mxu2 }
 0x191   : > { %v476_v56 = vadd.f32 %v635_v26, %v475_v55 }
 0x193   : > { %495 = vst.msk [vmem:[%s754_s27 + $0x70] sm:$0xff] %vm480_vm1, %v476_v56 }
 0x198   : > { %v477_v57 = vpop.f32.mrf.mxu2 }
 0x199   : > { %v478_v58 = vadd.f32 %v635_v26, %v477_v57 }
 0x19b   : > { %496 = vst.msk [vmem:[%s754_s27 + $0x78] sm:$0xff] %vm480_vm1, %v478_v58 }
 0x19c PF: > { %s15_s18 = sadd.s32 1, %s642_s18  }
 0x19d   : > { %p12_p4 = scmp.ge.s32.totalorder %s15_s18, 4  }
 0x19f   :  { %14 = sbr.rel (!%p12_p4) target bundleno = 1 (0x1), region = 70 }

</bundles_post_ra>
